<compile_context>
chip_gen: v5e
topology: v5e:2x2
jax: 0.10.0
libtpu: 0.0.40
codegen_flags: <defaults>
</compile_context>

<pallas_src>
import jax
import jax.numpy as jnp
from jax.experimental import pallas as pl
from jax.experimental.pallas import tpu as pltpu


def final_layer_kernel(x_ref, shift_ref, scale1p_ref, w_ref, b_ref, o_ref):
    # x_ref:       (TILE_T, H)   tokens for this (token-tile, batch) grid point
    # shift_ref:   (1, H)        f32 adaLN shift for this batch element
    # scale1p_ref: (1, H)        f32 (1 + scale) for this batch element
    # w_ref:       (H, P)        final linear weight (pre-transposed (in, out))
    # b_ref:       (1, P)        f32 final linear bias
    # o_ref:       (TILE_T, P)
    xf = x_ref[...].astype(jnp.float32)

    # RMSNorm(hidden_size, elementwise_affine=False, eps=1e-6), stats in f32.
    ms = jnp.mean(xf * xf, axis=-1, keepdims=True)
    xn = xf * jax.lax.rsqrt(ms + 1e-6)

    # modulate: x * (1 + scale) + shift  (broadcast over the token axis).
    xm = xn * scale1p_ref[...] + shift_ref[...]

    # Final linear on the MXU; operands in w dtype (bf16 for production),
    # accumulate in f32, add bias in f32, cast once on store.
    out = jnp.dot(xm.astype(w_ref.dtype), w_ref[...],
                  preferred_element_type=jnp.float32)
    o_ref[...] = (out + b_ref[...]).astype(o_ref.dtype)


def _estimate_vmem_bytes(tile_t, H, P, x_bytes, mm_bytes, out_bytes):
    b = 2 * tile_t * H * x_bytes        # x tile, double-buffered (native dtype)
    b += 2 * tile_t * P * out_bytes     # output tile, double-buffered (out dtype)
    b += 2 * H * P * mm_bytes           # final weight (double-buffered; tiny)
    b += 3 * tile_t * H * 4             # in-kernel f32 temporaries (xf / xn / xm)
    b += tile_t * H * mm_bytes          # cast matmul operand copy
    b += 16 * H * 4 + 16 * P * 4        # shift / scale / bias rows (tiny)
    return b


def final_layer(x, c, w_ada, b_ada, w_lin, b_lin, *,
                tile_t=512, matmul_dtype=None):
    """x: (B,T,H), c: (B,H), w_ada: (H,2H), b_ada: (2H,), w_lin: (H,P), b_lin: (P,).

    Weights are stored pre-transposed as (in, out). matmul_dtype: dtype of the
    MXU operands for the final linear (None -> x.dtype; use jnp.bfloat16 for
    realistic model sizes to run the MXU natively).
    """
    B, T, H = x.shape
    P = w_lin.shape[1]
    if matmul_dtype is None:
        matmul_dtype = x.dtype

    # ---- adaLN branch hoisted out of the kernel (one small batched matmul) ----
    cf = c.astype(jnp.float32)
    silu = cf * jax.nn.sigmoid(cf)
    ada = silu @ w_ada.astype(jnp.float32) + b_ada.astype(jnp.float32)  # (B, 2H)
    shift = ada[:, :H].reshape(B, 1, H)                                  # (B,1,H) f32
    scale1p = (1.0 + ada[:, H:]).reshape(B, 1, H)                        # (B,1,H) f32

    # ---- tiny parameter prep (no padding of the output dim) ----
    w = w_lin.astype(matmul_dtype)                       # (H, P)
    b = b_lin.astype(jnp.float32).reshape(1, P)          # (1, P)

    x_bytes = jnp.dtype(x.dtype).itemsize
    mm_bytes = jnp.dtype(matmul_dtype).itemsize
    out_bytes = jnp.dtype(x.dtype).itemsize

    # ---- generation-aware VMEM budget (v7x has 64 MiB/TC; v5e/v6e 128 MiB) ----
    try:
        vmem_cap = int(pltpu.get_tpu_info().vmem_capacity_bytes)
    except Exception:
        vmem_cap = 128 << 20
    if vmem_cap <= (64 << 20):          # v7x
        vmem_budget = 28 << 20
        vmem_ceiling = 48 << 20
    else:                               # v5e / v6e
        vmem_budget = 48 << 20
        vmem_ceiling = 96 << 20

    # ---- choose TILE_T: multiple of 256 (unless full T), fits the budget ----
    tile_t = min(tile_t, T)
    if tile_t < T:
        tile_t = max(256, (tile_t // 256) * 256)
        while (tile_t > 256 and
               _estimate_vmem_bytes(tile_t, H, P, x_bytes, mm_bytes, out_bytes)
               > vmem_budget):
            tile_t = max(256, ((tile_t // 2) // 256) * 256)
    n_t = pl.cdiv(T, tile_t)

    est = _estimate_vmem_bytes(tile_t, H, P, x_bytes, mm_bytes, out_bytes)
    vmem_limit = int(min(vmem_ceiling, max(16 << 20, int(1.25 * est) + (2 << 20))))

    # ---- advisory cost estimate so XLA schedules around the custom call ----
    cost = pl.CostEstimate(
        flops=2 * B * T * H * P + 6 * B * T * H,
        transcendentals=B * T,
        bytes_accessed=(B * T * H * x_bytes + H * P * mm_bytes
                        + B * T * P * out_bytes + 2 * B * H * 4 + P * 4),
    )

    out = pl.pallas_call(
        final_layer_kernel,
        out_shape=jax.ShapeDtypeStruct((B, T, P), x.dtype),
        grid_spec=pltpu.PrefetchScalarGridSpec(
            num_scalar_prefetch=0,
            # Token tiles outermost so v7x shards them across its two cores.
            grid=(n_t, B),
            in_specs=[
                # x: one (token-tile, H) slab per grid point; batch dim squeezed.
                pl.BlockSpec((None, tile_t, H), lambda ti, bi: (bi, ti, 0)),
                # shift / (1+scale): one (1, H) row per batch element.
                pl.BlockSpec((None, 1, H), lambda ti, bi: (bi, 0, 0)),
                pl.BlockSpec((None, 1, H), lambda ti, bi: (bi, 0, 0)),
                # final linear weight / bias: grid-invariant, tiny.
                pl.BlockSpec((H, P), lambda ti, bi: (0, 0)),
                pl.BlockSpec((1, P), lambda ti, bi: (0, 0)),
            ],
            out_specs=pl.BlockSpec((None, tile_t, P), lambda ti, bi: (bi, ti, 0)),
        ),
        compiler_params=pltpu.CompilerParams(
            dimension_semantics=("parallel", "parallel"),
            vmem_limit_bytes=vmem_limit,
        ),
        cost_estimate=cost,
    )(x, shift, scale1p, w, b)

    return out


def reference(x, c, w_ada, b_ada, w_lin, b_lin):
    """Pure-JAX reference mirroring the PyTorch forward (all f32)."""
    H = x.shape[-1]
    silu = c * jax.nn.sigmoid(c)
    ada = silu @ w_ada + b_ada
    shift, scale = ada[:, :H], ada[:, H:]
    xn = x * jax.lax.rsqrt(jnp.mean(x * x, axis=-1, keepdims=True) + 1e-6)
    xm = xn * (1.0 + scale[:, None, :]) + shift[:, None, :]
    return xm @ w_lin + b_lin


if __name__ == "__main__":
    B, T, H = 2, 8, 32
    patch_size, out_channels = 2, 4
    P = patch_size * out_channels

    key = jax.random.PRNGKey(0)
    kx, kc, k1, k2, k3, k4 = jax.random.split(key, 6)
    x = jax.random.normal(kx, (B, T, H), jnp.float32)
    c = jax.random.normal(kc, (B, H), jnp.float32)
    # Deterministic synthetic parameters (shapes from __init__; stored pre-transposed as (in, out)).
    w_ada = jax.random.normal(k1, (H, 2 * H), jnp.float32) * 0.05
    b_ada = jax.random.normal(k2, (2 * H,), jnp.float32) * 0.05
    w_lin = jax.random.normal(k3, (H, P), jnp.float32) * 0.05
    b_lin = jax.random.normal(k4, (P,), jnp.float32) * 0.05

    ref = reference(x, c, w_ada, b_ada, w_lin, b_lin)

    # Exact-dtype path (f32 matmul) — tight check against the f32 reference.
    out = jax.block_until_ready(
        final_layer(x, c, w_ada, b_ada, w_lin, b_lin, matmul_dtype=jnp.float32))
    assert out.shape == (B, T, P)
    assert jnp.allclose(out, ref, atol=1e-5, rtol=1e-5), float(jnp.max(jnp.abs(out - ref)))

    # Production path (bf16 MXU operands, f32 norm/modulate) — loose check.
    out_bf16 = jax.block_until_ready(
        final_layer(x, c, w_ada, b_ada, w_lin, b_lin, matmul_dtype=jnp.bfloat16))
    assert out_bf16.shape == (B, T, P)
    assert jnp.allclose(out_bf16.astype(jnp.float32), ref, atol=5e-2, rtol=5e-2), \
        float(jnp.max(jnp.abs(out_bf16.astype(jnp.float32) - ref)))

    print("KERNEL_OK")
</pallas_src>

<mosaic_0001>
module attributes {stable_mosaic.version = 11 : i64} {
  func.func @final_layer_kernel(%arg0: i32, %arg1: i32, %arg2: memref<1x8x32xf32, #tpu.memory_space<vmem>>, %arg3: memref<1x1x32xf32, #tpu.memory_space<vmem>>, %arg4: memref<1x1x32xf32, #tpu.memory_space<vmem>>, %arg5: memref<32x8xf32, #tpu.memory_space<vmem>>, %arg6: memref<1x8xf32, #tpu.memory_space<vmem>>, %arg7: memref<1x8x8xf32, #tpu.memory_space<vmem>>) attributes {dimension_semantics = [#tpu.dimension_semantics<parallel>, #tpu.dimension_semantics<parallel>], iteration_bounds = array<i64: 1, 2>, scalar_prefetch = 0 : i64, scratch_operands = 0 : i64, tpu.core_type = #tpu.core_type<tc>, window_params = [{transform_indices = @transform_0, window_bounds = array<i64: 1, 8, 32>}, {transform_indices = @transform_1, window_bounds = array<i64: 1, 1, 32>}, {transform_indices = @transform_2, window_bounds = array<i64: 1, 1, 32>}, {pipeline_mode = #tpu.pipeline_mode<synchronous>, transform_indices = @transform_3, window_bounds = array<i64: 32, 8>}, {pipeline_mode = #tpu.pipeline_mode<synchronous>, transform_indices = @transform_4, window_bounds = array<i64: 1, 8>}, {transform_indices = @transform_5, window_bounds = array<i64: 1, 8, 8>}]} {
    %c0 = arith.constant 0 : index
    %c0_0 = arith.constant 0 : index
    %c0_1 = arith.constant 0 : index
    %0 = vector.load %arg2[%c0, %c0_0, %c0_1] : memref<1x8x32xf32, #tpu.memory_space<vmem>>, vector<1x8x32xf32>
    %1 = vector.shape_cast %0 : vector<1x8x32xf32> to vector<8x32xf32>
    %2 = arith.mulf %1, %1 : vector<8x32xf32>
    %cst = arith.constant dense<0.000000e+00> : vector<8xf32>
    %3 = vector.multi_reduction <add>, %2, %cst [1] : vector<8x32xf32> to vector<8xf32>
    %4 = vector.shape_cast %3 : vector<8xf32> to vector<8x1xf32>
    %cst_2 = arith.constant 3.200000e+01 : f32
    %5 = vector.broadcast %cst_2 : f32 to vector<8x1xf32>
    %6 = arith.divf %4, %5 : vector<8x1xf32>
    %cst_3 = arith.constant 9.99999997E-7 : f32
    %7 = vector.broadcast %cst_3 : f32 to vector<8x1xf32>
    %8 = arith.addf %6, %7 : vector<8x1xf32>
    %9 = math.rsqrt %8 : vector<8x1xf32>
    %10 = vector.broadcast %9 : vector<8x1xf32> to vector<8x32xf32>
    %11 = arith.mulf %1, %10 : vector<8x32xf32>
    %c0_4 = arith.constant 0 : index
    %c0_5 = arith.constant 0 : index
    %c0_6 = arith.constant 0 : index
    %12 = vector.load %arg4[%c0_4, %c0_5, %c0_6] : memref<1x1x32xf32, #tpu.memory_space<vmem>>, vector<1x1x32xf32>
    %13 = vector.shape_cast %12 : vector<1x1x32xf32> to vector<1x32xf32>
    %14 = vector.broadcast %13 : vector<1x32xf32> to vector<8x32xf32>
    %15 = arith.mulf %11, %14 : vector<8x32xf32>
    %c0_7 = arith.constant 0 : index
    %c0_8 = arith.constant 0 : index
    %c0_9 = arith.constant 0 : index
    %16 = vector.load %arg3[%c0_7, %c0_8, %c0_9] : memref<1x1x32xf32, #tpu.memory_space<vmem>>, vector<1x1x32xf32>
    %17 = vector.shape_cast %16 : vector<1x1x32xf32> to vector<1x32xf32>
    %18 = vector.broadcast %17 : vector<1x32xf32> to vector<8x32xf32>
    %19 = arith.addf %15, %18 : vector<8x32xf32>
    %c0_10 = arith.constant 0 : index
    %c0_11 = arith.constant 0 : index
    %20 = vector.load %arg5[%c0_10, %c0_11] : memref<32x8xf32, #tpu.memory_space<vmem>>, vector<32x8xf32>
    %cst_12 = arith.constant dense<0.000000e+00> : vector<8x8xf32>
    %21 = tpu.matmul %19, %20, %cst_12 {dimension_numbers = #tpu.dot_dimension_numbers<[1], [0], [0], [1], [0, 0, 1, 1], [], []>} : vector<8x32xf32>, vector<32x8xf32>, vector<8x8xf32> -> vector<8x8xf32>
    %c0_13 = arith.constant 0 : index
    %c0_14 = arith.constant 0 : index
    %22 = vector.load %arg6[%c0_13, %c0_14] : memref<1x8xf32, #tpu.memory_space<vmem>>, vector<1x8xf32>
    %23 = vector.broadcast %22 : vector<1x8xf32> to vector<8x8xf32>
    %24 = arith.addf %21, %23 : vector<8x8xf32>
    %c0_15 = arith.constant 0 : index
    %c0_16 = arith.constant 0 : index
    %c0_17 = arith.constant 0 : index
    %25 = vector.load %arg7[%c0_15, %c0_16, %c0_17] : memref<1x8x8xf32, #tpu.memory_space<vmem>>, vector<1x8x8xf32>
    %26 = vector.shape_cast %25 : vector<1x8x8xf32> to vector<8x8xf32>
    %27 = vector.shape_cast %24 : vector<8x8xf32> to vector<1x8x8xf32>
    tpu.vector_store %arg7[%c0_15, %c0_16, %c0_17], %27 {strides = array<i32>} : memref<1x8x8xf32, #tpu.memory_space<vmem>>, vector<1x8x8xf32>,
    return
  }
  func.func @transform_0(%arg0: i32, %arg1: i32) -> (i32, i32, i32) {
    %c0_i32 = arith.constant 0 : i32
    %c0_i32_0 = arith.constant 0 : i32
    return %arg1, %arg0, %c0_i32 : i32, i32, i32
  }
  func.func @transform_1(%arg0: i32, %arg1: i32) -> (i32, i32, i32) {
    %c0_i32 = arith.constant 0 : i32
    %c0_i32_0 = arith.constant 0 : i32
    %c0_i32_1 = arith.constant 0 : i32
    return %arg1, %c0_i32, %c0_i32_0 : i32, i32, i32
  }
  func.func @transform_2(%arg0: i32, %arg1: i32) -> (i32, i32, i32) {
    %c0_i32 = arith.constant 0 : i32
    %c0_i32_0 = arith.constant 0 : i32
    %c0_i32_1 = arith.constant 0 : i32
    return %arg1, %c0_i32, %c0_i32_0 : i32, i32, i32
  }
  func.func @transform_3(%arg0: i32, %arg1: i32) -> (i32, i32) {
    %c0_i32 = arith.constant 0 : i32
    %c0_i32_0 = arith.constant 0 : i32
    %c0_i32_1 = arith.constant 0 : i32
    return %c0_i32, %c0_i32_0 : i32, i32
  }
  func.func @transform_4(%arg0: i32, %arg1: i32) -> (i32, i32) {
    %c0_i32 = arith.constant 0 : i32
    %c0_i32_0 = arith.constant 0 : i32
    %c0_i32_1 = arith.constant 0 : i32
    return %c0_i32, %c0_i32_0 : i32, i32
  }
  func.func @transform_5(%arg0: i32, %arg1: i32) -> (i32, i32, i32) {
    %c0_i32 = arith.constant 0 : i32
    %c0_i32_0 = arith.constant 0 : i32
    return %arg1, %arg0, %c0_i32 : i32, i32, i32
  }
}

</mosaic_0001>

<bundles_post_ra>
// kernel: tpu_custom_call.1
= control target key start
LH: loop header
LB: loop body
LE: loop exit
PB: predicated region body
PF: predicated region fallthrough
CT: control target
= control target key end

     0   :  { %10 = vsyncpa [#allocation3], 0  ;;  %s769_s0 = inlined_call_operand.vmem [shape: f32[2,8,32], index: 0, kind: input, shape index: {}]   ;;  %s770_s1 = inlined_call_operand.vmem [shape: f32[2,1,32], index: 1, kind: input, shape index: {}]   ;;  %s771_s2 = inlined_call_operand.vmem [shape: f32[2,1,32], index: 2, kind: input, shape index: {}]   ;;  %s772_s3 = inlined_call_operand.vmem [shape: f32[32,8], index: 3, kind: input, shape index: {}]   ;;  %s773_s4 = inlined_call_operand.vmem [shape: f32[1,8], index: 4, kind: input, shape index: {}]   ;;  %s774_s5 = inlined_call_operand.hbm [shape: f32[2,8,8], index: 5, kind: output, shape index: {}]  }
   0x1   :  { %12 = vsyncpa [#allocation3 + $0x1], 0  ;;  %s634_s18 = smov 0   ;;  %s636_s19 = smov 0  }
   0x2   :  { %s638_s20 = smov 0   ;;  %s640_s21 = smov 0  }
   0x3   :  { %s642_s22 = smov 0   ;;  %s644_s23 = smov 0  }
   0x4 LB: > { %s448_s24 = sadd.s32 4294967295, %s601_s23   ;;  %s449_s25 = sadd.s32 4294967294, %s601_s23   ;;  %s601_s23 = sphi %s644_s23, %s18_s23   ;;  %s597_s22 = sphi %s642_s22, %s781_s22   ;;  %s593_s21 = sphi %s640_s21, %s780_s21   ;;  %s589_s20 = sphi %s638_s20, %s779_s20   ;;  %s585_s19 = sphi %s636_s19, %s778_s19   ;;  %s581_s18 = sphi %s634_s18, %s777_s18  }
   0x5   : > { %s27_s26 = sadd.s32 1, %s597_s22  ;;  %s161_s27 = sadd.s32 1, %s589_s20 }
   0x6   : > { %p28_p0 = scmp.ge.s32.totalorder %s27_s26, 2  ;;  %p171_p1 = scmp.ne.s32.totalorder %s589_s20, %s585_s19 }
   0x7   : > { %p172_p2 = scmp.eq.s32.totalorder %s448_s24, 1  ;;  %p177_p3 = scmp.ne.s32.totalorder %s585_s19, %s581_s18 }
   0x8   : > { %s783_s26 = smov (%p28_p0, %s27_s26), 0  ;;  %p178_p5 = scmp.eq.s32.totalorder %s449_s25, 1 }
   0x9   : > { %p674_p4 = por %p172_p2, %p171_p1  ;;  %s156_s29 = ssub.s32 %s597_s22, %s783_s26 }
   0xa   : > { %p452_p6 = scmp.ge.s32.totalorder %s601_s23, 1  ;;  %p159_p7 = scmp.eq.s32.totalorder %s156_s29, 0 }
   0xb   : > { %p681_p8 = por %p178_p5, %p177_p3  ;;  %p224_p9 = scmp.lt.s32.totalorder %s601_s23, 3 }
   0xc   : > { %s687_s6 = scalar_select %p159_p7, %s589_s20, %s161_s27  }
   0xd   : > { %p225_p10 = pnand %p452_p6, %p224_p9 }
   0xe   : > { %p260_p11 = scmp.lt.s32.totalorder (!%p225_p10), %s593_s21, 1  ;;  %s257_s24 = sand.u32 (!%p225_p10), 1, %s585_s19  }
   0xf   : > { %228 = sbr.rel (%p225_p10) target bundleno = 303 (0x12f), region = 40  ;;  %s453_s25 = sshll.u32 (!%p225_p10), %s257_s24, 3 }
  0x10   : > { %s457_s27 = sshll.u32 (!%p225_p10), %s593_s21, 3 }
  0x11   : > { %s354_s9 = scalar_lea.hbm (!%p225_p10), %s774_s5, %s457_s27 }
  0x14   : > { %s691_s7 = scalar_select %p260_p11, %s593_s21, 1  ;;  %vm275_vm0 = vcmask 261120   ;;  %v603_v3 = vmov 32.0   ;;  %v312_v7 = vld [vmem:[%s772_s3 + $0x18] sm:$0xff]  ;;  %v311_v9 = vld [vmem:[%s772_s3 + $0x10] sm:$0xff]  ;;  %v310_v10 = vld [vmem:[%s772_s3 + $0x8] sm:$0xff] }
  0x15   : > { %519 = vrcp.f32 %v603_v3  ;;  %332 = vmatpush.msra.mxu0 %v312_v7  ;;  %v309_v11 = vld [vmem:[%s772_s3] sm:$0xff]  ;;  %vm340_vm5 = vcmask 64512  }
  0x16   : > { %s454_s8 = sshll.u32 %s691_s7, 3  ;;  %s269_s14 = scalar_lea.vmem %s770_s1, %s691_s7  ;;  %v518_v29 = vld [vmem:[%s773_s4] ss:$0 sm:$0xff] }
  0x17   : > { %s266_s11 = scalar_lea.vmem %s769_s0, %s454_s8  ;;  %s272_s17 = scalar_lea.vmem %s771_s2, %s691_s7  ;;  %333 = vmatpush.msra.mxu0 %v311_v9  ;;  %v517_v26 = vld [vmem:[%s269_s14] ss:$0 sm:$0xff] }
  0x18   : > { %v273_v0 = vld [vmem:[%s266_s11] sm:$0xff]  ;;  %s259_s11 = scalar_lea.vmem [#allocation2], %s453_s25  ;;  %s358_s7 = sshll.u32 %s354_s9, 4  ;;  %s359_s7 = int_to_ptr.hbm [resolvable:$true] %s358_s7 }
  0x19   : > { %v274_v1 = vmul.f32 %v273_v0, %v273_v0  ;;  %334 = vmatpush.msra.mxu0 %v310_v10  ;;  %v516_v23 = vld [vmem:[%s272_s17] ss:$0 sm:$0xff]  ;;  %s356_s12 = sshll.u32 %s259_s11, 4  ;;  %s343_s14 = scalar_lea.sflag [#allocation3], %s257_s24  ;;  %s357_s12 = int_to_ptr.vmem [resolvable:$true] %s356_s12 }
  0x1a   : > { %s537_s21 = sshra.s32 %s359_s7, 4  ;;  %s543_s25 = scalar_lea.hbm %s774_s5, 16  ;;  %s538_s21 = int_to_ptr.hbm [resolvable:$true] %s537_s21 }
  0x1b   : > { %v276_v2 = vsel %vm275_vm0, %v274_v1, 0.0  ;;  %v520_v4 = vpop.eup %519  ;;  %335 = vmatpush.msra.mxu0 %v309_v11  ;;  %s539_s13 = scalar_lea.hbm %s538_s21, 8  ;;  %p544_p1 = scmp.lt.s32.totalorder %s538_s21, %s774_s5 }
  0x1c   : > { %277 = vadd.xlane.f32.xlu0 %v276_v2  ;;  %v280_v5 = vmul.f32 32.0, %v520_v4  ;;  %vm284_vm1 = vweird.f32 %v520_v4  ;;  %p540_p12 = scmp.ne.s32.totalorder %s538_s21, %s539_s13  ;;  %p545_p2 = scmp.lt.s32.totalorder %s543_s25, %s539_s13 }
  0x1e   : > { %v281_v6 = vsub.f32 1.0, %v280_v5  ;;  %p541_p13 = pnand %p540_p12, %p674_p4  ;;  %p546_p3 = por %p545_p2, %p544_p1 }
  0x20   : > { %v282_v8 = vmul.f32 %v520_v4, %v281_v6  ;;  %p542_p0 = pneg %p541_p13 }
  0x22   : > { %v283_v12 = vadd.f32 %v520_v4, %v282_v8  ;;  %p547_p5 = pnand %p546_p3, %p542_p0 }
  0x24   : > { %v285_v13 = vsel %vm284_vm1, %v520_v4, %v283_v12 }
  0x8f   : > { %v278_v14 = vpop.xlane.xlu0 %277 }
  0x90   : > { %v286_v15 = vmul.f32 %v285_v13, %v278_v14 }
  0x92   : > { %v287_v16 = vadd.f32 1e-06, %v286_v15 }
  0x94   : > { %521 = vrsqrt.f32 %v287_v16  ;;  %vm294_vm3 = vweird.f32 %v287_v16 }
  0x9a   : > { %v522_v17 = vpop.eup %521 }
  0x9b   : > { %v289_v18 = vmul.f32 %v522_v17, %v287_v16  ;;  %vm295_vm2 = vweird.f32 %v522_v17 }
  0x9c   : > { %vm296_vm4 = vmor %vm294_vm3, %vm295_vm2 }
  0x9d   : > { %v290_v19 = vmul.f32 %v522_v17, %v289_v18 }
  0x9f   : > { %v291_v20 = vmul.f32 0.5, %v290_v19 }
  0xa1   : > { %v292_v21 = vsub.f32 1.5, %v291_v20 }
  0xa3   : > { %v293_v22 = vmul.f32 %v522_v17, %v292_v21 }
  0xa5   : > { %v297_v24 = vsel %vm296_vm4, %v522_v17, %v293_v22 }
  0xa6   : > { %v298_v25 = vmul.f32 %v297_v24, %v273_v0 }
  0xa8   : > { %v303_v27 = vmul.f32 %v516_v23, %v298_v25 }
  0xaa   : > { %v308_v28 = vadd.f32 %v517_v26, %v303_v27 }
  0xac   : > { %455 = vmatmul.msk.f32.vlgmr.msra.gmra.mxu0 %vm275_vm0, %v308_v28 }
 0x129   : > { %v337_v30 = vpop.f32.mrf.mxu0 }
 0x12a   : > { %v338_v31 = vadd.f32 %v518_v29, %v337_v30 }
 0x12c   : > { %341 = vst.msk [vmem:[%s259_s11] sm:$0xff] %vm340_vm5, %v338_v31 }
 0x12d   : > { %550 = shalt.err (!%p547_p5)
}
 0x12e   : > { %460 = dma.vmem_to_hbm [thread:$0]  (%p674_p4), %s357_s12, 128, %s359_s7, %s343_s14  }
 0x12f PF: > { %p466_p6 = scmp.ge.s32.totalorder %s601_s23, 2  ;;  %s370_s24 = sand.u32 1, %s581_s18  }
 0x130   : > { %s371_s8 = scalar_lea.sflag [#allocation3], %s370_s24 }
 0x131   : > { %p463_p7 = pnand %p466_p6, %p681_p8 }
 0x133   : > { %p464_p9 = pneg %p463_p7 }
 0x135   : > { %576 = dma.done.wait (%p464_p9), %s371_s8, 128  }
 0x136   : > { %578 = vsyncadd (%p464_p9), %s371_s8, 4294967168  ;;  %s18_s23 = sadd.s32 1, %s601_s23   ;;  %s777_s18 = smov %s585_s19 }
 0x137   : > { %p15_p10 = scmp.ge.s32.totalorder %s18_s23, 4   ;;  %s778_s19 = smov %s589_s20 }
 0x138   : > { %s779_s20 = smov %s687_s6  ;;  %s780_s21 = smov %s597_s22 }
 0x139   : > { %s781_s22 = smov %s783_s26  ;;  %17 = sbr.rel (!%p15_p10) target bundleno = 4 (0x4), region = 81 }
 0x13e   :  { %377 = vsyncpa [#allocation3], 1 }
 0x13f   :  { %379 = vsyncpa [#allocation3 + $0x1], 1 }

</bundles_post_ra>
